<compile_context>
chip_gen: v5e
topology: v5e:2x2
jax: 0.10.0
libtpu: 0.0.40
codegen_flags: <defaults>
</compile_context>

<pallas_src>
import functools

import jax
import jax.numpy as jnp
from jax import lax
from jax.experimental import pallas as pl
from jax.experimental.pallas import tpu as pltpu


def _contrastive_loss_kernel(x1_ref, x2_ref, lab_ref, out_ref, *,
                             margin, n_rows, tile_n, tiles_per_chunk,
                             need_mask):
    t = pl.program_id(1)

    # Per-chunk accumulator lives in the resident (1,1,1) output block.
    @pl.when(t == 0)
    def _init():
        out_ref[...] = jnp.zeros_like(out_ref)

    x1 = x1_ref[...].astype(jnp.float32)
    x2 = x2_ref[...].astype(jnp.float32)

    dot = jnp.sum(x1 * x2, axis=1, keepdims=True)        # (tile_n, 1)
    n1sq = jnp.sum(x1 * x1, axis=1, keepdims=True)
    n2sq = jnp.sum(x2 * x2, axis=1, keepdims=True)

    # cos = dot / (max(||x1||, eps) * max(||x2||, eps)), eps = 1e-8,
    # computed with EUP rsqrt instead of sqrt + divide.
    eps2 = jnp.float32(1e-16)
    cos = (dot
           * lax.rsqrt(jnp.maximum(n1sq, eps2))
           * lax.rsqrt(jnp.maximum(n2sq, eps2)))
    dist = 1.0 - cos

    lab = lab_ref[...].astype(jnp.float32)               # (tile_n, 1)
    m = jnp.float32(margin)
    per_row = lab * dist + (1.0 - lab) * jnp.maximum(m - dist, 0.0)

    if need_mask:
        # Zero rows beyond the true batch: padded rows of partial tiles and
        # the clamped duplicate tiles of the last (short) chunk.
        p = pl.program_id(0)
        global_tile = p * tiles_per_chunk + t
        row = lax.broadcasted_iota(jnp.int32, per_row.shape, 0)
        per_row = jnp.where(global_tile * tile_n + row < n_rows, per_row, 0.0)

    out_ref[...] += jnp.sum(per_row)                     # running SUM (f32)


def contrastive_loss(output1, output2, label, margin=0.5,
                     tile_n=None, num_chunks=2):
    """output1/output2: (N, ...) embeddings (any dtype, kept as-is so bf16
    inputs only move bf16 bytes); label: (N,). Returns scalar f32 loss."""
    n = output1.shape[0]
    x1 = output1.reshape(n, -1)
    x2 = output2.reshape(n, -1)
    d = x1.shape[1]
    lab = label.reshape(n, 1).astype(jnp.float32)

    # Tile rows so each input tile is ~2 MiB of HBM traffic (BlockSpec
    # double-buffers: ~2 inputs * 2 buffers * tile resident in VMEM).
    itemsize = jnp.dtype(x1.dtype).itemsize
    if tile_n is None:
        target = max(8, (2 * 1024 * 1024) // max(1, d * itemsize))
        tile_n = max(8, (target // 8) * 8)
    if tile_n >= n:
        tile_n = n                       # single full block (legal: == full dim)
    else:
        tile_n = max(8, (tile_n // 8) * 8)  # keep the (8, 128) layout rule

    total_tiles = pl.cdiv(n, tile_n)
    num_chunks = int(max(1, min(num_chunks, total_tiles)))
    tiles_per_chunk = pl.cdiv(total_tiles, num_chunks)
    need_mask = (num_chunks * tiles_per_chunk * tile_n) != n

    def _blk(p, t):
        blk = p * tiles_per_chunk + t
        if num_chunks * tiles_per_chunk != total_tiles:
            # Last chunk may have fewer tiles; clamp to a valid block index
            # (the duplicated tile is fully masked inside the kernel).
            blk = jnp.minimum(blk, total_tiles - 1)
        return blk

    kernel = functools.partial(
        _contrastive_loss_kernel,
        margin=float(margin), n_rows=n, tile_n=tile_n,
        tiles_per_chunk=tiles_per_chunk, need_mask=need_mask)

    partials = pl.pallas_call(
        kernel,
        out_shape=jax.ShapeDtypeStruct((num_chunks, 1, 1), jnp.float32),
        grid_spec=pltpu.PrefetchScalarGridSpec(
            num_scalar_prefetch=0,
            grid=(num_chunks, tiles_per_chunk),
            in_specs=[
                pl.BlockSpec((tile_n, d), lambda p, t: (_blk(p, t), 0)),
                pl.BlockSpec((tile_n, d), lambda p, t: (_blk(p, t), 0)),
                pl.BlockSpec((tile_n, 1), lambda p, t: (_blk(p, t), 0)),
            ],
            out_specs=pl.BlockSpec((1, 1, 1), lambda p, t: (p, 0, 0)),
        ),
        compiler_params=pltpu.CompilerParams(
            dimension_semantics=("parallel", "arbitrary"),
            vmem_limit_bytes=32 * 1024 * 1024),
    )(x1, x2, lab)

    # Single final scale by 1/N (partial sums per chunk are exact).
    return jnp.sum(partials) / n


def _reference(output1, output2, label, margin=0.5):
    n = output1.shape[0]
    x1 = output1.reshape(n, -1).astype(jnp.float32)
    x2 = output2.reshape(n, -1).astype(jnp.float32)
    eps = 1e-8
    cos = jnp.sum(x1 * x2, axis=1) / (
        jnp.maximum(jnp.linalg.norm(x1, axis=1), eps)
        * jnp.maximum(jnp.linalg.norm(x2, axis=1), eps))
    dist = 1.0 - cos
    lab = label.astype(jnp.float32)
    return jnp.mean(lab * dist + (1.0 - lab) * jnp.maximum(margin - dist, 0.0))


if __name__ == "__main__":
    key = jax.random.PRNGKey(0)
    k1, k2, k3, k4, k5, k6 = jax.random.split(key, 6)

    # Primary check: small shapes consistent with the module's forward.
    N, C, H, W = 2, 4, 16, 16
    o1 = jax.random.normal(k1, (N, C, H, W), dtype=jnp.float32)
    o2 = jax.random.normal(k2, (N, C, H, W), dtype=jnp.float32)
    lab = jax.random.bernoulli(k3, 0.5, (N,)).astype(jnp.float32)

    loss = contrastive_loss(o1, o2, lab, margin=0.5)
    jax.block_until_ready(loss)
    ref = _reference(o1, o2, lab, 0.5)
    assert jnp.allclose(loss, ref, atol=1e-5, rtol=1e-4), (loss, ref)

    # Secondary check: exercises the multi-tile / chunked / masked-partial path
    # (N=44 rows, TILE_N=16 -> 3 tiles split over 2 chunks, last tile partial).
    N2, C2, H2, W2 = 44, 8, 4, 4
    o1b = jax.random.normal(k4, (N2, C2, H2, W2), dtype=jnp.float32)
    o2b = jax.random.normal(k5, (N2, C2, H2, W2), dtype=jnp.float32)
    labb = jax.random.bernoulli(k6, 0.5, (N2,)).astype(jnp.float32)

    loss_b = contrastive_loss(o1b, o2b, labb, margin=0.5, tile_n=16)
    jax.block_until_ready(loss_b)
    ref_b = _reference(o1b, o2b, labb, 0.5)
    assert jnp.allclose(loss_b, ref_b, atol=1e-5, rtol=1e-4), (loss_b, ref_b)

    print("KERNEL_OK")
</pallas_src>

<mosaic_0001>
module attributes {stable_mosaic.version = 11 : i64} {
  func.func @_contrastive_loss_kernel(%arg0: i32, %arg1: i32, %arg2: memref<2x1024xf32, #tpu.memory_space<vmem>>, %arg3: memref<2x1024xf32, #tpu.memory_space<vmem>>, %arg4: memref<2x1xf32, #tpu.memory_space<vmem>>, %arg5: memref<1x1x1xf32, #tpu.memory_space<vmem>>) attributes {dimension_semantics = [#tpu.dimension_semantics<parallel>, #tpu.dimension_semantics<arbitrary>], iteration_bounds = array<i64: 1, 1>, scalar_prefetch = 0 : i64, scratch_operands = 0 : i64, tpu.core_type = #tpu.core_type<tc>, window_params = [{transform_indices = @transform_0, window_bounds = array<i64: 2, 1024>}, {transform_indices = @transform_1, window_bounds = array<i64: 2, 1024>}, {transform_indices = @transform_2, window_bounds = array<i64: 2, 1>}, {transform_indices = @transform_3, window_bounds = array<i64: 1, 1, 1>}]} {
    %c0_i32 = arith.constant 0 : i32
    %0 = arith.cmpi eq, %arg1, %c0_i32 : i32
    %1 = arith.extui %0 : i1 to i32
    %c0_i32_0 = arith.constant 0 : i32
    %2 = arith.cmpi ne, %1, %c0_i32_0 : i32
    scf.if %2 {
      %cst_21 = arith.constant 0.000000e+00 : f32
      %42 = vector.broadcast %cst_21 : f32 to vector<1x1x1xf32>
      %c0_22 = arith.constant 0 : index
      %c0_23 = arith.constant 0 : index
      %c0_24 = arith.constant 0 : index
      %43 = vector.load %arg5[%c0_22, %c0_23, %c0_24] : memref<1x1x1xf32, #tpu.memory_space<vmem>>, vector<1x1x1xf32>
      tpu.vector_store %arg5[%c0_22, %c0_23, %c0_24], %42 {strides = array<i32>} : memref<1x1x1xf32, #tpu.memory_space<vmem>>, vector<1x1x1xf32>,
    } else {
    }
    %c0 = arith.constant 0 : index
    %c0_1 = arith.constant 0 : index
    %3 = vector.load %arg2[%c0, %c0_1] : memref<2x1024xf32, #tpu.memory_space<vmem>>, vector<2x1024xf32>
    %c0_2 = arith.constant 0 : index
    %c0_3 = arith.constant 0 : index
    %4 = vector.load %arg3[%c0_2, %c0_3] : memref<2x1024xf32, #tpu.memory_space<vmem>>, vector<2x1024xf32>
    %5 = arith.mulf %3, %4 : vector<2x1024xf32>
    %cst = arith.constant dense<0.000000e+00> : vector<2xf32>
    %6 = vector.multi_reduction <add>, %5, %cst [1] : vector<2x1024xf32> to vector<2xf32>
    %7 = vector.shape_cast %6 : vector<2xf32> to vector<2x1xf32>
    %8 = arith.mulf %3, %3 : vector<2x1024xf32>
    %cst_4 = arith.constant dense<0.000000e+00> : vector<2xf32>
    %9 = vector.multi_reduction <add>, %8, %cst_4 [1] : vector<2x1024xf32> to vector<2xf32>
    %10 = vector.shape_cast %9 : vector<2xf32> to vector<2x1xf32>
    %11 = arith.mulf %4, %4 : vector<2x1024xf32>
    %cst_5 = arith.constant dense<0.000000e+00> : vector<2xf32>
    %12 = vector.multi_reduction <add>, %11, %cst_5 [1] : vector<2x1024xf32> to vector<2xf32>
    %13 = vector.shape_cast %12 : vector<2xf32> to vector<2x1xf32>
    %cst_6 = arith.constant 1.000000e-16 : f32
    %14 = vector.broadcast %cst_6 : f32 to vector<2x1xf32>
    %15 = arith.maximumf %10, %14 : vector<2x1xf32>
    %16 = math.rsqrt %15 : vector<2x1xf32>
    %17 = arith.mulf %7, %16 : vector<2x1xf32>
    %cst_7 = arith.constant 1.000000e-16 : f32
    %18 = vector.broadcast %cst_7 : f32 to vector<2x1xf32>
    %19 = arith.maximumf %13, %18 : vector<2x1xf32>
    %20 = math.rsqrt %19 : vector<2x1xf32>
    %21 = arith.mulf %17, %20 : vector<2x1xf32>
    %cst_8 = arith.constant 1.000000e+00 : f32
    %22 = vector.broadcast %cst_8 : f32 to vector<2x1xf32>
    %23 = arith.subf %22, %21 : vector<2x1xf32>
    %c0_9 = arith.constant 0 : index
    %c0_10 = arith.constant 0 : index
    %24 = vector.load %arg4[%c0_9, %c0_10] : memref<2x1xf32, #tpu.memory_space<vmem>>, vector<2x1xf32>
    %25 = arith.mulf %24, %23 : vector<2x1xf32>
    %cst_11 = arith.constant 1.000000e+00 : f32
    %26 = vector.broadcast %cst_11 : f32 to vector<2x1xf32>
    %27 = arith.subf %26, %24 : vector<2x1xf32>
    %cst_12 = arith.constant 5.000000e-01 : f32
    %28 = vector.broadcast %cst_12 : f32 to vector<2x1xf32>
    %29 = arith.subf %28, %23 : vector<2x1xf32>
    %cst_13 = arith.constant 0.000000e+00 : f32
    %30 = vector.broadcast %cst_13 : f32 to vector<2x1xf32>
    %31 = arith.maximumf %29, %30 : vector<2x1xf32>
    %32 = arith.mulf %27, %31 : vector<2x1xf32>
    %33 = arith.addf %25, %32 : vector<2x1xf32>
    %c0_14 = arith.constant 0 : index
    %c0_15 = arith.constant 0 : index
    %c0_16 = arith.constant 0 : index
    %34 = vector.load %arg5[%c0_14, %c0_15, %c0_16] : memref<1x1x1xf32, #tpu.memory_space<vmem>>, vector<1x1x1xf32>
    %35 = vector.shape_cast %33 : vector<2x1xf32> to vector<1x2x1xf32>
    %cst_17 = arith.constant dense<0.000000e+00> : vector<1xf32>
    %36 = vector.multi_reduction <add>, %35, %cst_17 [1, 2] : vector<1x2x1xf32> to vector<1xf32>
    %37 = vector.shape_cast %36 : vector<1xf32> to vector<1x1x1xf32>
    %38 = vector.extract %37[0, 0, 0] : f32 from vector<1x1x1xf32>
    %39 = vector.broadcast %38 : f32 to vector<1x1x1xf32>
    %40 = arith.addf %34, %39 : vector<1x1x1xf32>
    %c0_18 = arith.constant 0 : index
    %c0_19 = arith.constant 0 : index
    %c0_20 = arith.constant 0 : index
    %41 = vector.load %arg5[%c0_18, %c0_19, %c0_20] : memref<1x1x1xf32, #tpu.memory_space<vmem>>, vector<1x1x1xf32>
    tpu.vector_store %arg5[%c0_18, %c0_19, %c0_20], %40 {strides = array<i32>} : memref<1x1x1xf32, #tpu.memory_space<vmem>>, vector<1x1x1xf32>,
    return
  }
  func.func @transform_0(%arg0: i32, %arg1: i32) -> (i32, i32) {
    %c1_i32 = arith.constant 1 : i32
    %0 = arith.muli %arg0, %c1_i32 : i32
    %1 = arith.addi %0, %arg1 : i32
    %c0_i32 = arith.constant 0 : i32
    %c0_i32_0 = arith.constant 0 : i32
    return %1, %c0_i32 : i32, i32
  }
  func.func @transform_1(%arg0: i32, %arg1: i32) -> (i32, i32) {
    %c1_i32 = arith.constant 1 : i32
    %0 = arith.muli %arg0, %c1_i32 : i32
    %1 = arith.addi %0, %arg1 : i32
    %c0_i32 = arith.constant 0 : i32
    %c0_i32_0 = arith.constant 0 : i32
    return %1, %c0_i32 : i32, i32
  }
  func.func @transform_2(%arg0: i32, %arg1: i32) -> (i32, i32) {
    %c1_i32 = arith.constant 1 : i32
    %0 = arith.muli %arg0, %c1_i32 : i32
    %1 = arith.addi %0, %arg1 : i32
    %c0_i32 = arith.constant 0 : i32
    %c0_i32_0 = arith.constant 0 : i32
    return %1, %c0_i32 : i32, i32
  }
  func.func @transform_3(%arg0: i32, %arg1: i32) -> (i32, i32, i32) {
    %c0_i32 = arith.constant 0 : i32
    %c0_i32_0 = arith.constant 0 : i32
    %c0_i32_1 = arith.constant 0 : i32
    return %arg0, %c0_i32, %c0_i32_0 : i32, i32, i32
  }
}

</mosaic_0001>

<bundles_post_ra>
// kernel: tpu_custom_call.1
= control target key start
LH: loop header
LB: loop body
LE: loop exit
PB: predicated region body
PF: predicated region fallthrough
CT: control target
= control target key end

     0   :  { %8 = vsyncpa [#allocation3], 0  ;;  %s423_s0 = inlined_call_operand.hbm [shape: f32[2,1024], index: 0, kind: input, shape index: {}]   ;;  %s424_s1 = inlined_call_operand.hbm [shape: f32[2,1024], index: 1, kind: input, shape index: {}]   ;;  %s425_s2 = inlined_call_operand.vmem [shape: f32[2,1], index: 2, kind: input, shape index: {}]   ;;  %s426_s3 = inlined_call_operand.hbm [shape: f32[1,1,1], index: 3, kind: output, shape index: {}]  }
   0x1   :  { %9 = vsyncpa [#allocation6], 0 }
   0x2   :  { %10 = vsyncpa [#allocation4], 0  ;;  %s20_s14 = sshll.u32 %s423_s0, 4  ;;  %s361_s15 = smov [#allocation2]   ;;  %s21_s14 = int_to_ptr.hbm [resolvable:$true] %s20_s14 }
   0x3   :  { %s22_s16 = sshll.u32 %s361_s15, 4  ;;  %s35_s19 = sshll.u32 %s424_s1, 4  ;;  %s23_s16 = int_to_ptr.vmem [resolvable:$true] %s22_s16  ;;  %s36_s19 = int_to_ptr.hbm [resolvable:$true] %s35_s19 }
   0x4   :  { %25 = dma.hbm_to_vmem [thread:$0]  %s21_s14, 256, %s23_s16, [#allocation3]  }
   0x5   :  { %s362_s20 = smov [#allocation5]  }
   0x6   :  { %s37_s21 = sshll.u32 %s362_s20, 4  ;;  %s38_s21 = int_to_ptr.vmem [resolvable:$true] %s37_s21 }
   0x7   :  { %40 = dma.hbm_to_vmem [thread:$0]  %s36_s19, 256, %s38_s21, [#allocation6]  }
   0x8   :  { %355 = dma.done.wait [#allocation3], 256  }
   0x9   :  { %356 = vsyncadd [#allocation3], 4294967040 }
   0xa   :  { %357 = dma.done.wait [#allocation6], 256  }
   0xb   :  { %358 = vsyncadd [#allocation6], 4294967040  ;;  %v76_v0 = vld [vmem:[#allocation2] sm:$0xff]  ;;  %v77_v1 = vld [vmem:[#allocation2 + $0x8] sm:$0xff]  ;;  %vm103_vm0 = vcmask 1041408   ;;  %vm234_vm7 = vcmask 1024  }
   0xc   :  { %v78_v2 = vld [vmem:[#allocation5] sm:$0xff]  ;;  %v79_v3 = vld [vmem:[#allocation5 + $0x8] sm:$0xff]  ;;  %v121_v8 = vmul.f32 %v76_v0, %v76_v0  ;;  %v122_v11 = vmul.f32 %v77_v1, %v77_v1  ;;  %vm74_vm8 = vcmask 0   ;;  %s256_s25 = sshll.u32 %s426_s3, 4  ;;  %s257_s25 = int_to_ptr.hbm [resolvable:$true] %s256_s25 }
   0xd   :  { %v80_v4 = vmul.f32 %v78_v2, %v76_v0  ;;  %v81_v5 = vmul.f32 %v79_v3, %v77_v1  ;;  %v161_v26 = vmul.f32 %v78_v2, %v78_v2  ;;  %v162_v30 = vmul.f32 %v79_v3, %v79_v3 }
   0xf   :  { %84 = vst [vmem:[#allocation1] ss:$4 sm:$0xff] %v80_v4 }
  0x10   :  { %86 = vst [vmem:[#allocation1 + $0x20] ss:$4 sm:$0xff] %v81_v5 }
  0x16   :  { %v87_v6 = vld.sshfl [vmem:[#allocation1] sm:$0xff pattern:$0x73625140]  ;;  %v88_v7 = vld.sshfl [vmem:[#allocation1 + $0x8] sm:$0xff pattern:$0x73625140] }
  0x17   :  { %v89_v9 = vld.sshfl [vmem:[#allocation1 + $0x10] sm:$0xff pattern:$0x73625140]  ;;  %v90_v10 = vld.sshfl [vmem:[#allocation1 + $0x18] sm:$0xff pattern:$0x73625140] }
  0x18   :  { %v91_v12 = vld.sshfl [vmem:[#allocation1 + $0x20] sm:$0xff pattern:$0x73625140]  ;;  %v92_v13 = vld.sshfl [vmem:[#allocation1 + $0x28] sm:$0xff pattern:$0x73625140] }
  0x19   :  { %v93_v14 = vld.sshfl [vmem:[#allocation1 + $0x30] sm:$0xff pattern:$0x73625140]  ;;  %v94_v15 = vld.sshfl [vmem:[#allocation1 + $0x38] sm:$0xff pattern:$0x73625140] }
  0x1a   :  { %125 = vst [vmem:[#allocation1] ss:$4 sm:$0xff] %v121_v8  ;;  %v104_v16 = vsel %vm103_vm0, %v87_v6, 0.0  ;;  %v105_v17 = vsel %vm103_vm0, %v88_v7, 0.0  ;;  %v107_v19 = vsel %vm103_vm0, %v89_v9, 0.0  ;;  %v109_v21 = vsel %vm103_vm0, %v90_v10, 0.0 }
  0x1b   :  { %127 = vst [vmem:[#allocation1 + $0x20] ss:$4 sm:$0xff] %v122_v11  ;;  %v106_v18 = vadd.f32 %v105_v17, %v104_v16  ;;  %v111_v22 = vsel %vm103_vm0, %v91_v12, 0.0  ;;  %v113_v23 = vsel %vm103_vm0, %v92_v13, 0.0  ;;  %v115_v40 = vsel %vm103_vm0, %v93_v14, 0.0 }
  0x1c   :  { %v117_v44 = vsel %vm103_vm0, %v94_v15, 0.0 }
  0x1d   :  { %v108_v20 = vadd.f32 %v107_v19, %v106_v18 }
  0x1f   :  { %v110_v27 = vadd.f32 %v109_v21, %v108_v20 }
  0x21   :  { %v128_v24 = vld.sshfl [vmem:[#allocation1] sm:$0xff pattern:$0x73625140]  ;;  %v129_v25 = vld.sshfl [vmem:[#allocation1 + $0x8] sm:$0xff pattern:$0x73625140]  ;;  %v112_v33 = vadd.f32 %v111_v22, %v110_v27 }
  0x22   :  { %v130_v28 = vld.sshfl [vmem:[#allocation1 + $0x10] sm:$0xff pattern:$0x73625140]  ;;  %v131_v29 = vld.sshfl [vmem:[#allocation1 + $0x18] sm:$0xff pattern:$0x73625140] }
  0x23   :  { %v132_v31 = vld.sshfl [vmem:[#allocation1 + $0x20] sm:$0xff pattern:$0x73625140]  ;;  %v133_v32 = vld.sshfl [vmem:[#allocation1 + $0x28] sm:$0xff pattern:$0x73625140]  ;;  %v114_v42 = vadd.f32 %v113_v23, %v112_v33 }
  0x24   :  { %v134_v34 = vld.sshfl [vmem:[#allocation1 + $0x30] sm:$0xff pattern:$0x73625140]  ;;  %v135_v35 = vld.sshfl [vmem:[#allocation1 + $0x38] sm:$0xff pattern:$0x73625140] }
  0x25   :  { %v144_v36 = vsel %vm103_vm0, %v128_v24, 0.0  ;;  %v145_v37 = vsel %vm103_vm0, %v129_v25, 0.0  ;;  %v147_v38 = vsel %vm103_vm0, %v130_v28, 0.0  ;;  %165 = vst [vmem:[#allocation1] ss:$4 sm:$0xff] %v161_v26  ;;  %v149_v41 = vsel %vm103_vm0, %v131_v29, 0.0 }
  0x26   :  { %v146_v39 = vadd.f32 %v145_v37, %v144_v36  ;;  %167 = vst [vmem:[#allocation1 + $0x20] ss:$4 sm:$0xff] %v162_v30  ;;  %v151_v45 = vsel %vm103_vm0, %v132_v31, 0.0  ;;  %v116_v46 = vadd.f32 %v115_v40, %v114_v42  ;;  %v153_v48 = vsel %vm103_vm0, %v133_v32, 0.0  ;;  %v226_v37 = vld [vmem:[%s425_s2] sm:$0x3] }
  0x27   :  { %v155_v51 = vsel %vm103_vm0, %v134_v34, 0.0  ;;  %v157_v56 = vsel %vm103_vm0, %v135_v35, 0.0  ;;  %s364_s2 = smov [#allocation7]  }
  0x28   :  { %v148_v43 = vadd.f32 %v147_v38, %v146_v39  ;;  %v118_v49 = vadd.f32 %v117_v44, %v116_v46  ;;  %v228_v39 = vsub.f32 1.0, %v226_v37  ;;  %s254_s22 = sshll.u32 %s364_s2, 4  ;;  %s255_s22 = int_to_ptr.vmem [resolvable:$true] %s254_s22 }
  0x2a   :  { %v150_v47 = vadd.f32 %v149_v41, %v148_v43  ;;  %119 = vadd.xlane.f32.xlu1 %v118_v49 }
  0x2c   :  { %v152_v50 = vadd.f32 %v151_v45, %v150_v47  ;;  %v168_v52 = vld.sshfl [vmem:[#allocation1] sm:$0xff pattern:$0x73625140]  ;;  %v169_v53 = vld.sshfl [vmem:[#allocation1 + $0x8] sm:$0xff pattern:$0x73625140] }
  0x2d   :  { %v170_v54 = vld.sshfl [vmem:[#allocation1 + $0x10] sm:$0xff pattern:$0x73625140]  ;;  %v171_v57 = vld.sshfl [vmem:[#allocation1 + $0x18] sm:$0xff pattern:$0x73625140] }
  0x2e   :  { %v154_v55 = vadd.f32 %v153_v48, %v152_v50  ;;  %v184_v59 = vsel %vm103_vm0, %v168_v52, 0.0  ;;  %v185_v60 = vsel %vm103_vm0, %v169_v53, 0.0  ;;  %v187_v61 = vsel %vm103_vm0, %v170_v54, 0.0  ;;  %v172_v62 = vld.sshfl [vmem:[#allocation1 + $0x20] sm:$0xff pattern:$0x73625140] }
  0x2f   :  { %v186_v63 = vadd.f32 %v185_v60, %v184_v59  ;;  %v189_v1 = vsel %vm103_vm0, %v171_v57, 0.0  ;;  %v173_v2 = vld.sshfl [vmem:[#allocation1 + $0x28] sm:$0xff pattern:$0x73625140]  ;;  %v191_v4 = vsel %vm103_vm0, %v172_v62, 0.0  ;;  %v363_v45 = vmov 0.0  }
  0x30   :  { %v156_v58 = vadd.f32 %v155_v51, %v154_v55  ;;  %v174_v5 = vld.sshfl [vmem:[#allocation1 + $0x30] sm:$0xff pattern:$0x73625140]  ;;  %v193_v7 = vsel %vm103_vm0, %v173_v2, 0.0  ;;  %75 = vst.msk [vmem:[#allocation7] sm:$0x1] %vm74_vm8, %v363_v45 }
  0x31   :  { %v188_v3 = vadd.f32 %v187_v61, %v186_v63  ;;  %v175_v8 = vld.sshfl [vmem:[#allocation1 + $0x38] sm:$0xff pattern:$0x73625140]  ;;  %v195_v10 = vsel %vm103_vm0, %v174_v5, 0.0 }
  0x32   :  { %v158_v0 = vadd.f32 %v157_v56, %v156_v58  ;;  %v197_v12 = vsel %vm103_vm0, %v175_v8, 0.0 }
  0x33   :  { %v190_v6 = vadd.f32 %v189_v1, %v188_v3 }
  0x34   :  { %159 = vadd.xlane.f32.xlu0 %v158_v0 }
  0x35   :  { %v192_v9 = vadd.f32 %v191_v4, %v190_v6 }
  0x37   :  { %v194_v11 = vadd.f32 %v193_v7, %v192_v9  ;;  %v233_v53 = vld [vmem:[#allocation7] sm:$0x1] }
  0x39   :  { %v196_v13 = vadd.f32 %v195_v10, %v194_v11 }
  0x3b   :  { %v198_v14 = vadd.f32 %v197_v12, %v196_v13 }
  0x3d   :  { %199 = vadd.xlane.f32.xlu0 %v198_v14 }
  0x9d   :  { %v120_v31 = vpop.xlane.xlu1 %119 }
  0xa7   :  { %v160_v15 = vpop.xlane.xlu0 %159 }
  0xa8   :  { %v201_v16 = vmax.f32 %v160_v15, 1e-16 }
  0xaa   :  { %279 = vrsqrt.f32 %v201_v16  ;;  %vm208_vm2 = vweird.f32 %v201_v16 }
  0xb0   :  { %v280_v17 = vpop.eup %279  ;;  %v200_v19 = vpop.xlane.xlu0 %199 }
  0xb1   :  { %v203_v18 = vmul.f32 %v280_v17, %v201_v16  ;;  %v213_v21 = vmax.f32 %v200_v19, 1e-16  ;;  %vm209_vm1 = vweird.f32 %v280_v17 }
  0xb2   :  { %vm210_vm3 = vmor %vm208_vm2, %vm209_vm1 }
  0xb3   :  { %v204_v20 = vmul.f32 %v280_v17, %v203_v18  ;;  %281 = vrsqrt.f32 %v213_v21  ;;  %vm220_vm5 = vweird.f32 %v213_v21 }
  0xb5   :  { %v205_v22 = vmul.f32 0.5, %v204_v20 }
  0xb7   :  { %v206_v23 = vsub.f32 1.5, %v205_v22 }
  0xb9   :  { %v282_v24 = vpop.eup %281  ;;  %v207_v27 = vmul.f32 %v280_v17, %v206_v23 }
  0xba   :  { %v215_v25 = vmul.f32 %v282_v24, %v213_v21  ;;  %vm221_vm4 = vweird.f32 %v282_v24 }
  0xbb   :  { %v211_v30 = vsel %vm210_vm3, %v280_v17, %v207_v27  ;;  %vm222_vm6 = vmor %vm220_vm5, %vm221_vm4 }
  0xbc   :  { %v216_v26 = vmul.f32 %v282_v24, %v215_v25  ;;  %v212_v33 = vmul.f32 %v211_v30, %v120_v31 }
  0xbe   :  { %v217_v28 = vmul.f32 0.5, %v216_v26 }
  0xc0   :  { %v218_v29 = vsub.f32 1.5, %v217_v28 }
  0xc2   :  { %v219_v32 = vmul.f32 %v282_v24, %v218_v29 }
  0xc4   :  { %v223_v34 = vsel %vm222_vm6, %v282_v24, %v219_v32 }
  0xc5   :  { %v224_v35 = vmul.f32 %v223_v34, %v212_v33 }
  0xc7   :  { %v225_v36 = vsub.f32 1.0, %v224_v35 }
  0xc9   :  { %v229_v38 = vsub.f32 0.5, %v225_v36  ;;  %v227_v41 = vmul.f32 %v226_v37, %v225_v36 }
  0xcb   :  { %v230_v40 = vmax.f32 %v229_v38, 0.0 }
  0xcd   :  { %v231_v42 = vmul.f32 %v230_v40, %v228_v39 }
  0xcf   :  { %v232_v43 = vadd.f32 %v231_v42, %v227_v41 }
  0xd1   :  { %v235_v44 = vsel %vm234_vm7, %v232_v43, 0.0 }
  0xd2   :  { %236 = vadd.xlane.f32.xlu1 %v235_v44 }
 0x145   :  { %v237_v46 = vpop.xlane.xlu1 %236 }
 0x146   :  { %v238_v47 = vrot.slane %v237_v46, 4 }
 0x148   :  { %v239_v48 = vadd.f32 %v238_v47, %v237_v46 }
 0x14a   :  { %v240_v49 = vrot.slane %v239_v48, 2 }
 0x14c   :  { %v241_v50 = vadd.f32 %v240_v49, %v239_v48 }
 0x14e   :  { %v242_v51 = vrot.slane %v241_v50, 1 }
 0x150   :  { %v243_v52 = vadd.f32 %v242_v51, %v241_v50 }
 0x152   :  { %273 = vpush %v243_v52 }
 0x183   :  { %s274_s26 = spop %273 }
 0x184   :  { %v245_v54 = vstv %s274_s26 }
 0x185   :  { %v246_v55 = vadd.f32 %v245_v54, %v233_v53 }
 0x187   :  { %248 = vst.msk [vmem:[#allocation7] sm:$0x1] %vm74_vm8, %v246_v55 }
 0x188   :  { %259 = dma.vmem_to_hbm [thread:$0]  %s255_s22, 16, %s257_s25, [#allocation4]  }
 0x189   :  { %359 = dma.done.wait [#allocation4], 16  }
 0x18a   :  { %360 = vsyncadd [#allocation4], 4294967280 }
 0x18b   :  { %264 = vsyncpa [#allocation3], 1 }
 0x18c   :  { %265 = vsyncpa [#allocation6], 1 }
 0x18d   :  { %266 = vsyncpa [#allocation4], 1 }

</bundles_post_ra>
